<compile_context>
chip_gen: v6e
topology: v6e:2x2x1
jax: 0.10.0
libtpu: 0.0.40
codegen_flags: <defaults>
</compile_context>

<pallas_src>
import jax
import jax.numpy as jnp
import numpy as np
from jax.experimental import pallas as pl
from jax.experimental.pallas import tpu as pltpu


_TINY_BYTES = 64 * 1024            # below this, skip the custom call entirely
_CHUNK_TARGET_BYTES = 512 * 1024   # aim for ~0.5 MiB per DMA chunk (K in 4-8 for multi-MiB)
_MAX_CHUNKS = 8                    # cap on outstanding chunk DMAs per shard
_SHARD_MIN_BYTES = 1 << 20         # shard across 2 TCs only for >= 1 MiB copies
_NUM_CORE_SHARDS = 2               # v7x has 2 TensorCores; harmless loop on v5e/v6e


def _chunk_rows(rows: int, row_bytes: int):
    """Split `rows` leading-dim rows into K near-equal static chunks."""
    total = rows * row_bytes
    k = max(1, min(_MAX_CHUNKS, rows, pl.cdiv(total, _CHUNK_TARGET_BYTES)))
    base, rem = divmod(rows, k)
    return [base + (1 if i < rem else 0) for i in range(k)]


def _make_identity_dma_kernel(rows_per_shard: int, chunk_sizes: tuple):
    """HBM->HBM copy of this core's shard, as K outstanding chunk DMAs."""

    def kernel(x_hbm_ref, o_hbm_ref, copy_sems):
        shard_start = pl.program_id(0) * rows_per_shard
        # Start ALL chunk DMAs before waiting on any: multiple outstanding
        # descriptors let the DMA engines overlap issue latency.
        copies = []
        off = 0
        for i, rows in enumerate(chunk_sizes):
            sl = pl.ds(shard_start + off, rows)
            cp = pltpu.make_async_copy(
                x_hbm_ref.at[sl], o_hbm_ref.at[sl], copy_sems.at[i]
            )
            cp.start()
            copies.append(cp)
            off += rows
        for cp in copies:
            cp.wait()

    return kernel


def _copy_identity(x: jax.Array) -> jax.Array:
    """Non-donated path: materialize a fresh buffer via pure HBM->HBM DMA."""
    was_scalar = x.ndim == 0
    x_in = x.reshape(1) if was_scalar else x

    nbytes = int(x_in.size) * x_in.dtype.itemsize
    lead = int(x_in.shape[0])
    row_bytes = max(1, nbytes // max(lead, 1))

    # Shard across the 2 TensorCores (v7x) only when it is worthwhile and the
    # leading dim splits evenly; otherwise one shard (single grid step).
    num_shards = (
        _NUM_CORE_SHARDS
        if (lead % _NUM_CORE_SHARDS == 0
            and lead >= _NUM_CORE_SHARDS
            and nbytes >= _SHARD_MIN_BYTES)
        else 1
    )
    rows_per_shard = lead // num_shards
    chunk_sizes = tuple(_chunk_rows(rows_per_shard, row_bytes))

    out = pl.pallas_call(
        _make_identity_dma_kernel(rows_per_shard, chunk_sizes),
        out_shape=jax.ShapeDtypeStruct(x_in.shape, x_in.dtype),
        grid=(num_shards,),
        in_specs=[pl.BlockSpec(memory_space=pl.ANY)],    # stay in HBM (no VMEM)
        out_specs=pl.BlockSpec(memory_space=pl.ANY),     # write directly in HBM
        scratch_shapes=[pltpu.SemaphoreType.DMA((len(chunk_sizes),))],
        compiler_params=pltpu.CompilerParams(
            dimension_semantics=("parallel",)),          # megacore shard on v7x
        cost_estimate=pl.CostEstimate(
            flops=0, transcendentals=0, bytes_accessed=2 * nbytes),
    )(x_in)
    return out.reshape(()) if was_scalar else out


def _identity_alias_kernel(x_hbm_ref, o_hbm_ref, flag_ref):
    # Input and output share the same HBM buffer (input_output_aliases={0: 0}),
    # so no data movement is required: zero bytes of HBM traffic when the
    # caller donates x.  The SMEM flag write keeps the body non-empty.
    flag_ref[0] = jnp.int32(1)


def _aliased_identity(x: jax.Array) -> jax.Array:
    """Donated path: zero-byte identity via input/output aliasing."""
    was_scalar = x.ndim == 0
    x_in = x.reshape(1) if was_scalar else x
    out = pl.pallas_call(
        _identity_alias_kernel,
        out_shape=jax.ShapeDtypeStruct(x_in.shape, x_in.dtype),
        in_specs=[pl.BlockSpec(memory_space=pl.ANY)],
        out_specs=pl.BlockSpec(memory_space=pl.ANY),
        scratch_shapes=[pltpu.SMEM((1,), jnp.int32)],
        input_output_aliases={0: 0},
    )(x_in)
    return out.reshape(()) if was_scalar else out


def identity_pallas(x: jax.Array, *, donate: bool = False,
                    min_dma_bytes: int = _TINY_BYTES) -> jax.Array:
    """Pallas implementation of IdentityClass.forward: returns x unchanged.

    donate=False (default): tiny / zero-size arrays are returned as-is
      (launch overhead would dominate); larger arrays are copied into a fresh
      buffer with a chunked, core-sharded HBM->HBM DMA.
    donate=True: aliased zero-byte path.  For it to be truly zero-copy the
      caller must donate x at the jit boundary (e.g. donate_argnums=0);
      otherwise XLA inserts its own copy (still correct).
    """
    if x.size == 0:
        return x
    if donate:
        return _aliased_identity(x)
    nbytes = int(x.size) * x.dtype.itemsize
    if nbytes < min_dma_bytes:
        return x
    return _copy_identity(x)


if __name__ == "__main__":
    key = jax.random.PRNGKey(0)
    k1, k2, k3 = jax.random.split(key, 3)

    # 1) Small NCHW-like tensor (typical module input): tiny early-return path.
    x_small = jax.random.normal(key, (2, 4, 16, 16), dtype=jnp.float32)
    y_small = jax.block_until_ready(identity_pallas(x_small))
    assert y_small.shape == x_small.shape and y_small.dtype == x_small.dtype
    assert bool(jnp.all(y_small == x_small)), "identity mismatch (small)"

    # 2) 4 MiB tensor: chunked + core-sharded HBM->HBM DMA path (2 shards x 4 chunks).
    x_big = jax.random.normal(k1, (512, 2048), dtype=jnp.float32)
    y_big = jax.block_until_ready(identity_pallas(x_big))
    assert y_big.shape == x_big.shape and y_big.dtype == x_big.dtype
    assert bool(jnp.all(y_big == x_big)), "identity mismatch (big)"

    # 3) Odd leading dim (single shard, uneven chunk sizes).
    x_odd = jax.random.normal(k2, (257, 1024), dtype=jnp.float32)
    y_odd = jax.block_until_ready(identity_pallas(x_odd))
    assert bool(jnp.all(y_odd == x_odd)), "identity mismatch (odd)"

    # 4) Donated / aliased zero-byte path (caller donates x under jit).
    donated_identity = jax.jit(lambda t: identity_pallas(t, donate=True),
                               donate_argnums=(0,))
    x_don = jax.random.normal(k3, (128, 512), dtype=jnp.float32)
    x_don_host = np.asarray(x_don)  # keep values on host; device buffer is donated
    y_don = jax.block_until_ready(donated_identity(x_don))
    assert y_don.shape == x_don_host.shape and y_don.dtype == jnp.float32
    assert bool(jnp.all(y_don == jnp.asarray(x_don_host))), "identity mismatch (donated)"

    # 5) Misc ranks / dtypes (tiny and zero-size early-return paths).
    for shape, dtype in [((8,), jnp.bfloat16), ((3, 5), jnp.float32),
                         ((), jnp.int32), ((0, 7), jnp.float32)]:
        n = 1
        for s in shape:
            n *= s
        xi = jnp.arange(max(n, 1), dtype=jnp.int32)[:n].reshape(shape).astype(dtype)
        yi = jax.block_until_ready(identity_pallas(xi))
        assert yi.shape == xi.shape and yi.dtype == xi.dtype
        assert bool(jnp.all(yi == xi)), f"identity mismatch for {shape} {dtype}"

    print("KERNEL_OK")
</pallas_src>

<mosaic_0001>
module attributes {stable_mosaic.version = 11 : i64} {
  func.func @kernel(%arg0: i32, %arg1: memref<512x2048xf32, #tpu.memory_space<any>>, %arg2: memref<512x2048xf32, #tpu.memory_space<any>>, %arg3: memref<4x!tpu.dma_semaphore, #tpu.memory_space<semaphore_mem>>) attributes {dimension_semantics = [#tpu.dimension_semantics<parallel>], iteration_bounds = array<i64: 2>, scalar_prefetch = 0 : i64, scratch_operands = 1 : i64, tpu.core_type = #tpu.core_type<tc>, window_params = [{}, {}]} {
    %c256_i32 = arith.constant 256 : i32
    %0 = arith.muli %arg0, %c256_i32 : i32
    %c0_i32 = arith.constant 0 : i32
    %1 = arith.addi %0, %c0_i32 : i32
    %c0_i32_0 = arith.constant 0 : i32
    %c0_i32_1 = arith.constant 0 : i32
    %2 = tpu.memref_slice %arg1[%1, %c0_i32_1] : memref<512x2048xf32, #tpu.memory_space<any>> -> memref<64x2048xf32, #tpu.memory_space<any>>
    %c0_i32_2 = arith.constant 0 : i32
    %3 = tpu.memref_slice %arg2[%1, %c0_i32_2] : memref<512x2048xf32, #tpu.memory_space<any>> -> memref<64x2048xf32, #tpu.memory_space<any>>
    %4 = tpu.memref_slice %arg3[%c0_i32_0] : memref<4x!tpu.dma_semaphore, #tpu.memory_space<semaphore_mem>> -> memref<1x!tpu.dma_semaphore, #tpu.memory_space<semaphore_mem>>
    %5 = tpu.memref_squeeze %4 : memref<1x!tpu.dma_semaphore, #tpu.memory_space<semaphore_mem>> -> memref<!tpu.dma_semaphore, #tpu.memory_space<semaphore_mem>>
    tpu.enqueue_dma source(%2 : memref<64x2048xf32, #tpu.memory_space<any>>) target(%3 : memref<64x2048xf32, #tpu.memory_space<any>>) target_semaphore(%5 : memref<!tpu.dma_semaphore, #tpu.memory_space<semaphore_mem>>)
    %c64_i32 = arith.constant 64 : i32
    %6 = arith.addi %0, %c64_i32 : i32
    %c1_i32 = arith.constant 1 : i32
    %c0_i32_3 = arith.constant 0 : i32
    %7 = tpu.memref_slice %arg1[%6, %c0_i32_3] : memref<512x2048xf32, #tpu.memory_space<any>> -> memref<64x2048xf32, #tpu.memory_space<any>>
    %c0_i32_4 = arith.constant 0 : i32
    %8 = tpu.memref_slice %arg2[%6, %c0_i32_4] : memref<512x2048xf32, #tpu.memory_space<any>> -> memref<64x2048xf32, #tpu.memory_space<any>>
    %9 = tpu.memref_slice %arg3[%c1_i32] : memref<4x!tpu.dma_semaphore, #tpu.memory_space<semaphore_mem>> -> memref<1x!tpu.dma_semaphore, #tpu.memory_space<semaphore_mem>>
    %10 = tpu.memref_squeeze %9 : memref<1x!tpu.dma_semaphore, #tpu.memory_space<semaphore_mem>> -> memref<!tpu.dma_semaphore, #tpu.memory_space<semaphore_mem>>
    tpu.enqueue_dma source(%7 : memref<64x2048xf32, #tpu.memory_space<any>>) target(%8 : memref<64x2048xf32, #tpu.memory_space<any>>) target_semaphore(%10 : memref<!tpu.dma_semaphore, #tpu.memory_space<semaphore_mem>>)
    %c128_i32 = arith.constant 128 : i32
    %11 = arith.addi %0, %c128_i32 : i32
    %c2_i32 = arith.constant 2 : i32
    %c0_i32_5 = arith.constant 0 : i32
    %12 = tpu.memref_slice %arg1[%11, %c0_i32_5] : memref<512x2048xf32, #tpu.memory_space<any>> -> memref<64x2048xf32, #tpu.memory_space<any>>
    %c0_i32_6 = arith.constant 0 : i32
    %13 = tpu.memref_slice %arg2[%11, %c0_i32_6] : memref<512x2048xf32, #tpu.memory_space<any>> -> memref<64x2048xf32, #tpu.memory_space<any>>
    %14 = tpu.memref_slice %arg3[%c2_i32] : memref<4x!tpu.dma_semaphore, #tpu.memory_space<semaphore_mem>> -> memref<1x!tpu.dma_semaphore, #tpu.memory_space<semaphore_mem>>
    %15 = tpu.memref_squeeze %14 : memref<1x!tpu.dma_semaphore, #tpu.memory_space<semaphore_mem>> -> memref<!tpu.dma_semaphore, #tpu.memory_space<semaphore_mem>>
    tpu.enqueue_dma source(%12 : memref<64x2048xf32, #tpu.memory_space<any>>) target(%13 : memref<64x2048xf32, #tpu.memory_space<any>>) target_semaphore(%15 : memref<!tpu.dma_semaphore, #tpu.memory_space<semaphore_mem>>)
    %c192_i32 = arith.constant 192 : i32
    %16 = arith.addi %0, %c192_i32 : i32
    %c3_i32 = arith.constant 3 : i32
    %c0_i32_7 = arith.constant 0 : i32
    %17 = tpu.memref_slice %arg1[%16, %c0_i32_7] : memref<512x2048xf32, #tpu.memory_space<any>> -> memref<64x2048xf32, #tpu.memory_space<any>>
    %c0_i32_8 = arith.constant 0 : i32
    %18 = tpu.memref_slice %arg2[%16, %c0_i32_8] : memref<512x2048xf32, #tpu.memory_space<any>> -> memref<64x2048xf32, #tpu.memory_space<any>>
    %19 = tpu.memref_slice %arg3[%c3_i32] : memref<4x!tpu.dma_semaphore, #tpu.memory_space<semaphore_mem>> -> memref<1x!tpu.dma_semaphore, #tpu.memory_space<semaphore_mem>>
    %20 = tpu.memref_squeeze %19 : memref<1x!tpu.dma_semaphore, #tpu.memory_space<semaphore_mem>> -> memref<!tpu.dma_semaphore, #tpu.memory_space<semaphore_mem>>
    tpu.enqueue_dma source(%17 : memref<64x2048xf32, #tpu.memory_space<any>>) target(%18 : memref<64x2048xf32, #tpu.memory_space<any>>) target_semaphore(%20 : memref<!tpu.dma_semaphore, #tpu.memory_space<semaphore_mem>>)
    %c0_i32_9 = arith.constant 0 : i32
    %c0_i32_10 = arith.constant 0 : i32
    %21 = tpu.memref_slice %arg1[%1, %c0_i32_10] : memref<512x2048xf32, #tpu.memory_space<any>> -> memref<64x2048xf32, #tpu.memory_space<any>>
    %c0_i32_11 = arith.constant 0 : i32
    %22 = tpu.memref_slice %arg2[%1, %c0_i32_11] : memref<512x2048xf32, #tpu.memory_space<any>> -> memref<64x2048xf32, #tpu.memory_space<any>>
    %23 = tpu.memref_slice %arg3[%c0_i32_9] : memref<4x!tpu.dma_semaphore, #tpu.memory_space<semaphore_mem>> -> memref<1x!tpu.dma_semaphore, #tpu.memory_space<semaphore_mem>>
    %24 = tpu.memref_squeeze %23 : memref<1x!tpu.dma_semaphore, #tpu.memory_space<semaphore_mem>> -> memref<!tpu.dma_semaphore, #tpu.memory_space<semaphore_mem>>
    tpu.wait_dma2 semaphore(%24 : memref<!tpu.dma_semaphore, #tpu.memory_space<semaphore_mem>>) src(%21 : memref<64x2048xf32, #tpu.memory_space<any>>) dst(%22 : memref<64x2048xf32, #tpu.memory_space<any>>)
    %c1_i32_12 = arith.constant 1 : i32
    %c0_i32_13 = arith.constant 0 : i32
    %25 = tpu.memref_slice %arg1[%6, %c0_i32_13] : memref<512x2048xf32, #tpu.memory_space<any>> -> memref<64x2048xf32, #tpu.memory_space<any>>
    %c0_i32_14 = arith.constant 0 : i32
    %26 = tpu.memref_slice %arg2[%6, %c0_i32_14] : memref<512x2048xf32, #tpu.memory_space<any>> -> memref<64x2048xf32, #tpu.memory_space<any>>
    %27 = tpu.memref_slice %arg3[%c1_i32_12] : memref<4x!tpu.dma_semaphore, #tpu.memory_space<semaphore_mem>> -> memref<1x!tpu.dma_semaphore, #tpu.memory_space<semaphore_mem>>
    %28 = tpu.memref_squeeze %27 : memref<1x!tpu.dma_semaphore, #tpu.memory_space<semaphore_mem>> -> memref<!tpu.dma_semaphore, #tpu.memory_space<semaphore_mem>>
    tpu.wait_dma2 semaphore(%28 : memref<!tpu.dma_semaphore, #tpu.memory_space<semaphore_mem>>) src(%25 : memref<64x2048xf32, #tpu.memory_space<any>>) dst(%26 : memref<64x2048xf32, #tpu.memory_space<any>>)
    %c2_i32_15 = arith.constant 2 : i32
    %c0_i32_16 = arith.constant 0 : i32
    %29 = tpu.memref_slice %arg1[%11, %c0_i32_16] : memref<512x2048xf32, #tpu.memory_space<any>> -> memref<64x2048xf32, #tpu.memory_space<any>>
    %c0_i32_17 = arith.constant 0 : i32
    %30 = tpu.memref_slice %arg2[%11, %c0_i32_17] : memref<512x2048xf32, #tpu.memory_space<any>> -> memref<64x2048xf32, #tpu.memory_space<any>>
    %31 = tpu.memref_slice %arg3[%c2_i32_15] : memref<4x!tpu.dma_semaphore, #tpu.memory_space<semaphore_mem>> -> memref<1x!tpu.dma_semaphore, #tpu.memory_space<semaphore_mem>>
    %32 = tpu.memref_squeeze %31 : memref<1x!tpu.dma_semaphore, #tpu.memory_space<semaphore_mem>> -> memref<!tpu.dma_semaphore, #tpu.memory_space<semaphore_mem>>
    tpu.wait_dma2 semaphore(%32 : memref<!tpu.dma_semaphore, #tpu.memory_space<semaphore_mem>>) src(%29 : memref<64x2048xf32, #tpu.memory_space<any>>) dst(%30 : memref<64x2048xf32, #tpu.memory_space<any>>)
    %c3_i32_18 = arith.constant 3 : i32
    %c0_i32_19 = arith.constant 0 : i32
    %33 = tpu.memref_slice %arg1[%16, %c0_i32_19] : memref<512x2048xf32, #tpu.memory_space<any>> -> memref<64x2048xf32, #tpu.memory_space<any>>
    %c0_i32_20 = arith.constant 0 : i32
    %34 = tpu.memref_slice %arg2[%16, %c0_i32_20] : memref<512x2048xf32, #tpu.memory_space<any>> -> memref<64x2048xf32, #tpu.memory_space<any>>
    %35 = tpu.memref_slice %arg3[%c3_i32_18] : memref<4x!tpu.dma_semaphore, #tpu.memory_space<semaphore_mem>> -> memref<1x!tpu.dma_semaphore, #tpu.memory_space<semaphore_mem>>
    %36 = tpu.memref_squeeze %35 : memref<1x!tpu.dma_semaphore, #tpu.memory_space<semaphore_mem>> -> memref<!tpu.dma_semaphore, #tpu.memory_space<semaphore_mem>>
    tpu.wait_dma2 semaphore(%36 : memref<!tpu.dma_semaphore, #tpu.memory_space<semaphore_mem>>) src(%33 : memref<64x2048xf32, #tpu.memory_space<any>>) dst(%34 : memref<64x2048xf32, #tpu.memory_space<any>>)
    return
  }
}

</mosaic_0001>

<bundles_post_ra>
// kernel: tpu_custom_call.1
= control target key start
LH: loop header
LB: loop body
LE: loop exit
PB: predicated region body
PF: predicated region fallthrough
CT: control target
= control target key end

     0   :  { %s205_s6 = smov 0   ;;  %s238_s0 = inlined_call_operand.hbm [shape: f32[512,2048], index: 0, kind: input, shape index: {}]   ;;  %s239_s1 = inlined_call_operand.hbm [shape: f32[512,2048], index: 1, kind: output, shape index: {}]  }
   0x1 LB: > { %s134_s7 = sshll.u32 %s187_s6, 8  ;;  %s189_s18 = smov [#allocation2]   ;;  %s187_s6 = sphi %s205_s6, %s11_s6  }
   0x2   : > { %s14_s8 = sshra.s32 %s134_s7, 3  ;;  %s28_s9 = sadd.s32 64, %s134_s7 }
   0x3   : > { %s151_s10 = sshll.u32 %s14_s8, 11  ;;  %s29_s11 = sshra.s32 %s28_s9, 3 }
   0x4   : > { %s18_s14 = scalar_lea.hbm %s238_s0, %s151_s10  ;;  %s20_s17 = scalar_lea.hbm %s239_s1, %s151_s10 }
   0x5   : > { %s190_s19 = smov 131072   ;;  %s191_s20 = smov 0  }
   0x6   : > { %27 = dma.general %s18_s14, 16384, %s20_s17, %s189_s18, %s190_s19, [#allocation4], %s191_s20, 0  }
   0x7   : > { %s153_s21 = sshll.u32 %s29_s11, 11  ;;  %s192_s28 = smov [#allocation2 + $0x1]  }
   0x8   : > { %s33_s24 = scalar_lea.hbm %s238_s0, %s153_s21  ;;  %s35_s27 = scalar_lea.hbm %s239_s1, %s153_s21 }
   0x9   : > { %43 = dma.general %s33_s24, 16384, %s35_s27, %s192_s28, %s190_s19, [#allocation6], %s191_s20, 0  }
   0xa   : > { %s44_s29 = sadd.s32 128, %s134_s7  ;;  %s60_s2 = sadd.s32 192, %s134_s7 }
   0xb   : > { %s45_s30 = sshra.s32 %s44_s29, 3  ;;  %s61_s4 = sshra.s32 %s60_s2, 3 }
   0xc   : > { %s155_s3 = sshll.u32 %s45_s30, 11  ;;  %s193_s13 = smov [#allocation2 + $0x2]  }
   0xd   : > { %s49_s9 = scalar_lea.hbm %s238_s0, %s155_s3  ;;  %s51_s12 = scalar_lea.hbm %s239_s1, %s155_s3 }
   0xe   : > { %59 = dma.general %s49_s9, 16384, %s51_s12, %s193_s13, %s190_s19, [#allocation8], %s191_s20, 0  }
   0xf   : > { %s157_s14 = sshll.u32 %s61_s4, 11  ;;  %s194_s22 = smov [#allocation2 + $0x3]  }
  0x10   : > { %s65_s17 = scalar_lea.hbm %s238_s0, %s157_s14  ;;  %s67_s7 = scalar_lea.hbm %s239_s1, %s157_s14 }
  0x11   : > { %75 = dma.general %s65_s17, 16384, %s67_s7, %s194_s22, %s190_s19, [#allocation10], %s191_s20, 0  }
  0x12   : > { %177 = dma.done.wait [#allocation2], 16384 }
  0x13   : > { %178 = vsyncadd [#allocation2], 4294950912 }
  0x14   : > { %179 = dma.done.wait [#allocation2 + $0x1], 16384 }
  0x15   : > { %180 = vsyncadd [#allocation2 + $0x1], 4294950912 }
  0x16   : > { %181 = dma.done.wait [#allocation2 + $0x2], 16384 }
  0x17   : > { %182 = vsyncadd [#allocation2 + $0x2], 4294950912 }
  0x18   : > { %183 = dma.done.wait [#allocation2 + $0x3], 16384 }
  0x19   : > { %184 = vsyncadd [#allocation2 + $0x3], 4294950912  ;;  %s11_s6 = sadd.s32 1, %s187_s6  }
  0x1a   : > { %p8_p0 = scmp.ge.s32.totalorder %s11_s6, 2  }
  0x1c   :  { %10 = sbr.rel (!%p8_p0) target bundleno = 1 (0x1), region = 33 }
  0x21   :  { %86 = vsyncmov [#allocation2] }
  0x24   :  { %s87_s23 = vpop.sfrf %86 }
  0x25   :  { %p147_p1 = scmp.ne.s32.totalorder %s87_s23, 0 }
  0x27   :  { %91 = shalt.err (%p147_p1)  }
  0x28   :  { %93 = vsyncmov [#allocation2 + $0x1] }
  0x2b   :  { %s94_s19 = vpop.sfrf %93 }
  0x2c   :  { %p148_p2 = scmp.ne.s32.totalorder %s94_s19, 0 }
  0x2e   :  { %98 = shalt.err (%p148_p2)  }
  0x2f   :  { %100 = vsyncmov [#allocation2 + $0x2] }
  0x32   :  { %s101_s20 = vpop.sfrf %100 }
  0x33   :  { %p149_p3 = scmp.ne.s32.totalorder %s101_s20, 0 }
  0x35   :  { %105 = shalt.err (%p149_p3)  }
  0x36   :  { %107 = vsyncmov [#allocation2 + $0x3] }
  0x39   :  { %s108_s24 = vpop.sfrf %107 }
  0x3a   :  { %p150_p4 = scmp.ne.s32.totalorder %s108_s24, 0 }
  0x3c   :  { %112 = shalt.err (%p150_p4)  }

</bundles_post_ra>
